<compile_context>
chip_gen: v6e
topology: v6e:2x2x1
jax: 0.10.0
libtpu: 0.0.40
codegen_flags: <defaults>
</compile_context>

<pallas_src>
import functools
import math

import jax
import jax.numpy as jnp
from jax.experimental import pallas as pl
from jax.experimental.pallas import tpu as pltpu


def _scale_ff_kernel(x_ref, w1_ref, b1_ref, w2_ref, b2_ref, o_ref,
                     *, scale, hidden, h_chunk):
    # Row tile in native dtype straight to the MXU (f32 accumulation below).
    x = x_ref[...]                                            # (tm, dim)

    # Accumulator for the second matmul, kept in f32 vregs.
    acc = jnp.zeros(o_ref.shape, dtype=jnp.float32)           # (tm, dim)

    n_chunks = -(-hidden // h_chunk)                          # static python int
    for c in range(n_chunks):
        lo = c * h_chunk
        hi = min(hidden, lo + h_chunk)

        w1c = w1_ref[:, lo:hi]                                # (dim, hc)
        b1c = b1_ref[:, lo:hi]                                # (1, hc)
        w2c = w2_ref[lo:hi, :]                                # (hc, dim)

        # Linear 1 (f32 accumulate) + Swish (EUP sigmoid + VPU mul).
        h = jnp.dot(x, w1c, preferred_element_type=jnp.float32)
        h = h + b1c.astype(jnp.float32)
        h = h * jax.nn.sigmoid(h)                             # Swish / SiLU
        # Back to native dtype for full-rate MXU on the second matmul.
        h = h.astype(w2_ref.dtype)

        acc = acc + jnp.dot(h, w2c, preferred_element_type=jnp.float32)

    y = acc + b2_ref[...].astype(jnp.float32)
    # Scale.forward: fn(x) * self.scale
    o_ref[...] = (y * scale).astype(o_ref.dtype)


def _pick_tm(rows):
    """Row-tile size: ~256 rows for large inputs; for small inputs split into
    >=2 tiles so the grid can pipeline and (on v7x) use both TensorCores."""
    if rows >= 512:
        return 256
    if rows <= 8:
        return 8
    half = -(-rows // 2)                 # ceil(rows / 2)
    return max(8, -(-half // 8) * 8)     # round up to a sublane multiple


def scale_feedforward(x, w1, b1, w2, b2, *, scale):
    """Computes `scale * (swish(x @ w1 + b1) @ w2 + b2)` with a Pallas kernel.

    x : (batch, seq, dim)
    w1: (dim, hidden), b1: (hidden,)
    w2: (hidden, dim), b2: (dim,)
    """
    batch, seq, dim = x.shape
    hidden = w1.shape[1]
    rows = batch * seq

    x2 = x.reshape(rows, dim)
    b1_2 = b1.reshape(1, hidden)
    b2_2 = b2.reshape(1, dim)

    tm = _pick_tm(rows)
    rows_padded = pl.cdiv(rows, tm) * tm
    if rows_padded != rows:
        # Pad so every row tile is full; padded rows are computed and dropped.
        x2 = jnp.pad(x2, ((0, rows_padded - rows), (0, 0)))
    grid = (rows_padded // tm,)

    h_chunk = min(hidden, 512)           # cap the live (tm, h_chunk) f32 slab

    # Explicit VMEM budget: double-buffered x/out tiles + resident weights +
    # the f32 intermediates, with 2x headroom, capped at v7x's 64 MiB.
    bpe = jnp.dtype(x.dtype).itemsize
    footprint = (
        2 * tm * dim * bpe               # x tiles (double-buffered)
        + 2 * tm * dim * bpe             # out tiles (double-buffered)
        + dim * hidden * bpe             # w1 (resident)
        + hidden * dim * bpe             # w2 (resident)
        + (hidden + dim) * bpe           # biases
        + tm * h_chunk * 4               # h chunk (f32)
        + tm * dim * 4                   # accumulator (f32)
    )
    vmem_limit = min(64 * 1024 * 1024,
                     max(32 * 1024 * 1024, int(2 * footprint)))

    out = pl.pallas_call(
        functools.partial(_scale_ff_kernel, scale=scale,
                          hidden=hidden, h_chunk=h_chunk),
        out_shape=jax.ShapeDtypeStruct((rows_padded, dim), x.dtype),
        grid_spec=pltpu.PrefetchScalarGridSpec(
            num_scalar_prefetch=0,
            grid=grid,
            in_specs=[
                pl.BlockSpec((tm, dim), lambda i: (i, 0)),        # x tile
                pl.BlockSpec((dim, hidden), lambda i: (0, 0)),    # w1 (resident)
                pl.BlockSpec((1, hidden), lambda i: (0, 0)),      # b1
                pl.BlockSpec((hidden, dim), lambda i: (0, 0)),    # w2 (resident)
                pl.BlockSpec((1, dim), lambda i: (0, 0)),         # b2
            ],
            out_specs=pl.BlockSpec((tm, dim), lambda i: (i, 0)),
        ),
        compiler_params=pltpu.CompilerParams(
            dimension_semantics=("parallel",),
            vmem_limit_bytes=vmem_limit,
        ),
    )(x2, w1, b1_2, w2, b2_2)

    if rows_padded != rows:
        out = out[:rows]
    return out.reshape(batch, seq, dim)


def reference(x, w1, b1, w2, b2, *, scale):
    h = x @ w1 + b1
    h = h * jax.nn.sigmoid(h)
    y = h @ w2 + b2
    return y * scale


if __name__ == "__main__":
    key = jax.random.PRNGKey(0)
    batch, seq, dim, mult = 2, 8, 32, 4
    hidden = dim * mult
    scale = 0.5  # Scale(0.5, FeedForward(...)) as in the Conformer block

    k_x, k_w1, k_b1, k_w2, k_b2 = jax.random.split(key, 5)
    x = jax.random.normal(k_x, (batch, seq, dim), dtype=jnp.float32)
    w1 = jax.random.normal(k_w1, (dim, hidden), dtype=jnp.float32) * 0.05
    b1 = jax.random.normal(k_b1, (hidden,), dtype=jnp.float32) * 0.01
    w2 = jax.random.normal(k_w2, (hidden, dim), dtype=jnp.float32) * 0.05
    b2 = jax.random.normal(k_b2, (dim,), dtype=jnp.float32) * 0.01

    out = scale_feedforward(x, w1, b1, w2, b2, scale=scale)
    out = jax.block_until_ready(out)

    ref = reference(x, w1, b1, w2, b2, scale=scale)
    assert out.shape == (batch, seq, dim)
    assert jnp.allclose(out, ref, atol=1e-5, rtol=1e-5), "mismatch vs reference"

    # Secondary check: ragged row count (exercises the padded last tile).
    x_odd = jax.random.normal(key, (1, 11, dim), dtype=jnp.float32)
    out_odd = jax.block_until_ready(
        scale_feedforward(x_odd, w1, b1, w2, b2, scale=scale))
    ref_odd = reference(x_odd, w1, b1, w2, b2, scale=scale)
    assert jnp.allclose(out_odd, ref_odd, atol=1e-5, rtol=1e-5), "ragged mismatch"

    print("KERNEL_OK")
</pallas_src>

<mosaic_0001>
module attributes {stable_mosaic.version = 11 : i64} {
  func.func @_scale_ff_kernel(%arg0: i32, %arg1: memref<8x32xf32, #tpu.memory_space<vmem>>, %arg2: memref<32x128xf32, #tpu.memory_space<vmem>>, %arg3: memref<1x128xf32, #tpu.memory_space<vmem>>, %arg4: memref<128x32xf32, #tpu.memory_space<vmem>>, %arg5: memref<1x32xf32, #tpu.memory_space<vmem>>, %arg6: memref<8x32xf32, #tpu.memory_space<vmem>>) attributes {dimension_semantics = [#tpu.dimension_semantics<parallel>], iteration_bounds = array<i64: 2>, scalar_prefetch = 0 : i64, scratch_operands = 0 : i64, tpu.core_type = #tpu.core_type<tc>, window_params = [{transform_indices = @transform_0, window_bounds = array<i64: 8, 32>}, {pipeline_mode = #tpu.pipeline_mode<synchronous>, transform_indices = @transform_1, window_bounds = array<i64: 32, 128>}, {pipeline_mode = #tpu.pipeline_mode<synchronous>, transform_indices = @transform_2, window_bounds = array<i64: 1, 128>}, {pipeline_mode = #tpu.pipeline_mode<synchronous>, transform_indices = @transform_3, window_bounds = array<i64: 128, 32>}, {pipeline_mode = #tpu.pipeline_mode<synchronous>, transform_indices = @transform_4, window_bounds = array<i64: 1, 32>}, {transform_indices = @transform_5, window_bounds = array<i64: 8, 32>}]} {
    %c0 = arith.constant 0 : index
    %c0_0 = arith.constant 0 : index
    %0 = vector.load %arg1[%c0, %c0_0] : memref<8x32xf32, #tpu.memory_space<vmem>>, vector<8x32xf32>
    %cst = arith.constant 0.000000e+00 : f32
    %1 = vector.broadcast %cst : f32 to vector<8x32xf32>
    %c0_1 = arith.constant 0 : index
    %c0_2 = arith.constant 0 : index
    %2 = vector.load %arg2[%c0_1, %c0_2] : memref<32x128xf32, #tpu.memory_space<vmem>>, vector<32x128xf32>
    %c0_3 = arith.constant 0 : index
    %c0_4 = arith.constant 0 : index
    %3 = vector.load %arg3[%c0_3, %c0_4] : memref<1x128xf32, #tpu.memory_space<vmem>>, vector<1x128xf32>
    %c0_5 = arith.constant 0 : index
    %c0_6 = arith.constant 0 : index
    %4 = vector.load %arg4[%c0_5, %c0_6] : memref<128x32xf32, #tpu.memory_space<vmem>>, vector<128x32xf32>
    %cst_7 = arith.constant dense<0.000000e+00> : vector<8x128xf32>
    %5 = tpu.matmul %0, %2, %cst_7 {dimension_numbers = #tpu.dot_dimension_numbers<[1], [0], [0], [1], [0, 0, 1, 1], [], []>} : vector<8x32xf32>, vector<32x128xf32>, vector<8x128xf32> -> vector<8x128xf32>
    %6 = vector.broadcast %3 : vector<1x128xf32> to vector<8x128xf32>
    %7 = arith.addf %5, %6 : vector<8x128xf32>
    %8 = arith.negf %7 : vector<8x128xf32>
    %9 = math.exp %8 : vector<8x128xf32>
    %cst_8 = arith.constant 1.000000e+00 : f32
    %10 = vector.broadcast %cst_8 : f32 to vector<8x128xf32>
    %11 = arith.addf %10, %9 : vector<8x128xf32>
    %12 = arith.divf %10, %11 : vector<8x128xf32>
    %13 = arith.mulf %7, %12 : vector<8x128xf32>
    %cst_9 = arith.constant dense<0.000000e+00> : vector<8x32xf32>
    %14 = tpu.matmul %13, %4, %cst_9 {dimension_numbers = #tpu.dot_dimension_numbers<[1], [0], [0], [1], [0, 0, 1, 1], [], []>} : vector<8x128xf32>, vector<128x32xf32>, vector<8x32xf32> -> vector<8x32xf32>
    %15 = arith.addf %1, %14 : vector<8x32xf32>
    %c0_10 = arith.constant 0 : index
    %c0_11 = arith.constant 0 : index
    %16 = vector.load %arg5[%c0_10, %c0_11] : memref<1x32xf32, #tpu.memory_space<vmem>>, vector<1x32xf32>
    %17 = vector.broadcast %16 : vector<1x32xf32> to vector<8x32xf32>
    %18 = arith.addf %15, %17 : vector<8x32xf32>
    %cst_12 = arith.constant 5.000000e-01 : f32
    %19 = vector.broadcast %cst_12 : f32 to vector<8x32xf32>
    %20 = arith.mulf %18, %19 : vector<8x32xf32>
    %c0_13 = arith.constant 0 : index
    %c0_14 = arith.constant 0 : index
    %21 = vector.load %arg6[%c0_13, %c0_14] : memref<8x32xf32, #tpu.memory_space<vmem>>, vector<8x32xf32>
    tpu.vector_store %arg6[%c0_13, %c0_14], %20 {strides = array<i32>} : memref<8x32xf32, #tpu.memory_space<vmem>>, vector<8x32xf32>,
    return
  }
  func.func @transform_0(%arg0: i32) -> (i32, i32) {
    %c0_i32 = arith.constant 0 : i32
    %c0_i32_0 = arith.constant 0 : i32
    return %arg0, %c0_i32 : i32, i32
  }
  func.func @transform_1(%arg0: i32) -> (i32, i32) {
    %c0_i32 = arith.constant 0 : i32
    %c0_i32_0 = arith.constant 0 : i32
    %c0_i32_1 = arith.constant 0 : i32
    return %c0_i32, %c0_i32_0 : i32, i32
  }
  func.func @transform_2(%arg0: i32) -> (i32, i32) {
    %c0_i32 = arith.constant 0 : i32
    %c0_i32_0 = arith.constant 0 : i32
    %c0_i32_1 = arith.constant 0 : i32
    return %c0_i32, %c0_i32_0 : i32, i32
  }
  func.func @transform_3(%arg0: i32) -> (i32, i32) {
    %c0_i32 = arith.constant 0 : i32
    %c0_i32_0 = arith.constant 0 : i32
    %c0_i32_1 = arith.constant 0 : i32
    return %c0_i32, %c0_i32_0 : i32, i32
  }
  func.func @transform_4(%arg0: i32) -> (i32, i32) {
    %c0_i32 = arith.constant 0 : i32
    %c0_i32_0 = arith.constant 0 : i32
    %c0_i32_1 = arith.constant 0 : i32
    return %c0_i32, %c0_i32_0 : i32, i32
  }
  func.func @transform_5(%arg0: i32) -> (i32, i32) {
    %c0_i32 = arith.constant 0 : i32
    %c0_i32_0 = arith.constant 0 : i32
    return %arg0, %c0_i32 : i32, i32
  }
}

</mosaic_0001>

<bundles_post_ra>
// kernel: tpu_custom_call.1
= control target key start
LH: loop header
LB: loop body
LE: loop exit
PB: predicated region body
PF: predicated region fallthrough
CT: control target
= control target key end

     0   :  { %10 = vsyncpa [#allocation3], 0  ;;  %s880_s0 = inlined_call_operand.vmem [shape: f32[16,32], index: 0, kind: input, shape index: {}]   ;;  %s881_s1 = inlined_call_operand.vmem [shape: f32[32,128], index: 1, kind: input, shape index: {}]   ;;  %s882_s2 = inlined_call_operand.vmem [shape: f32[1,128], index: 2, kind: input, shape index: {}]   ;;  %s883_s3 = inlined_call_operand.vmem [shape: f32[128,32], index: 3, kind: input, shape index: {}]   ;;  %s884_s4 = inlined_call_operand.vmem [shape: f32[1,32], index: 4, kind: input, shape index: {}]   ;;  %s885_s5 = inlined_call_operand.hbm [shape: f32[16,32], index: 5, kind: output, shape index: {}]  }
   0x1   :  { %12 = vsyncpa [#allocation3 + $0x1], 0  ;;  %s703_s18 = smov 0   ;;  %s705_s19 = smov 0  }
   0x2   :  { %s707_s20 = smov 0   ;;  %s709_s21 = smov 0  }
   0x3 LB: > { %s724_s22 = sadd.s32 4294967295, %s668_s21   ;;  %s481_s23 = sadd.s32 4294967294, %s668_s21   ;;  %s668_s21 = sphi %s709_s21, %s891_s21   ;;  %s664_s20 = sphi %s707_s20, %s890_s20   ;;  %s660_s19 = sphi %s705_s19, %s889_s19   ;;  %s656_s18 = sphi %s703_s18, %s888_s18  }
   0x4   : > { %s728_s24 = sadd.s32 1, %s668_s21   ;;  %s135_s25 = sadd.s32 1, %s664_s20 }
   0x5   : > { %s132_s26 = ssub.s32 %s668_s21, %s728_s24  ;;  %p145_p0 = scmp.ne.s32.totalorder %s664_s20, %s660_s19 }
   0x6   : > { %p133_p1 = scmp.eq.s32.totalorder %s132_s26, 0  ;;  %p146_p2 = scmp.eq.s32.totalorder %s724_s22, 1 }
   0x7   : > { %p151_p3 = scmp.ne.s32.totalorder %s660_s19, %s656_s18  ;;  %p152_p4 = scmp.eq.s32.totalorder %s481_s23, 1 }
   0x8   : > { %s739_s27 = scalar_select %p133_p1, %s664_s20, %s135_s25  }
   0x9   : > { %p741_p5 = por %p146_p2, %p145_p0  ;;  %p745_p6 = por %p152_p4, %p151_p3 }
   0xa   : > { %p484_p7 = scmp.ge.s32.totalorder %s668_s21, 1  ;;  %p189_p8 = scmp.lt.s32.totalorder %s668_s21, 3 }
   0xc   : > { %p190_p9 = pnand %p484_p7, %p189_p8 }
   0xd   : > { %p216_p10 = scmp.lt.s32.totalorder (!%p190_p9), %s724_s22, 1  ;;  %s213_s26 = sand.u32 (!%p190_p9), 1, %s660_s19  }
   0xe   : > { %193 = sbr.rel (%p190_p9) target bundleno = 467 (0x1d3), region = 40  ;;  %s485_s30 = sshll.u32 (!%p190_p9), %s213_s26, 3 }
   0xf   : > { %s492_s8 = sshll.u32 (!%p190_p9), %s724_s22, 7  ;;  %s409_s14 = scalar_lea.sflag (!%p190_p9), [#allocation3], %s213_s26 }
  0x10   : > { %s420_s13 = scalar_lea.hbm (!%p190_p9), %s885_s5, %s492_s8  ;;  %s672_s16 = smov (!%p190_p9), [#allocation2]  }
  0x13   : > { %v224_v0 = vld [vmem:[%s881_s1 + $0x18] sm:$0xff]  ;;  %v670_v1 = vmov 0.0   ;;  %v223_v2 = vld [vmem:[%s881_s1 + $0x10] sm:$0xff]  ;;  %vm671_vm0 = vmmov 0   ;;  %s217_s9 = scalar_select %p216_p10, %s724_s22, 1  ;;  %v222_v3 = vld [vmem:[%s881_s1 + $0x8] sm:$0xff] }
  0x14   : > { %517 = vmatprep.subr.mxu0 %v670_v1  ;;  %525 = vmatprep.mubr.msk.f32.mxu0 %vm671_vm0, %v670_v1  ;;  %v221_v4 = vld [vmem:[%s881_s1] sm:$0xff]  ;;  %vm248_vm1 = vcmask 261120   ;;  %v241_v6 = vld [vmem:[%s883_s3 + $0x78] sm:$0xff]  ;;  %v240_v7 = vld [vmem:[%s883_s3 + $0x70] sm:$0xff]  ;;  %s612_s22 = sshll.u32 %s672_s16, 4  ;;  %s613_s22 = int_to_ptr.vmem [resolvable:$false] %s612_s22 }
  0x15   : > { %518 = vmatpush3.msra.mxu0 %v224_v0  ;;  %528 = vmatprep.subr.mxu1 %v670_v1  ;;  %s486_s12 = sshll.u32 %s217_s9, 3  ;;  %v239_v8 = vld [vmem:[%s883_s3 + $0x68] sm:$0xff]  ;;  %v238_v9 = vld [vmem:[%s883_s3 + $0x60] sm:$0xff]  ;;  %v237_v10 = vld [vmem:[%s883_s3 + $0x58] sm:$0xff]  ;;  %s215_s9 = scalar_lea.vmem [#allocation2], %s485_s30 }
  0x16   : > { %519 = vmatprep.subr.mxu0 %v670_v1  ;;  %560 = vmatprep.mubr.msk.f32.mxu1 %vm671_vm0, %v670_v1  ;;  %s219_s17 = scalar_lea.vmem %s880_s0, %s486_s12  ;;  %v236_v11 = vld [vmem:[%s883_s3 + $0x50] sm:$0xff]  ;;  %v235_v12 = vld [vmem:[%s883_s3 + $0x48] sm:$0xff]  ;;  %v234_v13 = vld [vmem:[%s883_s3 + $0x40] sm:$0xff]  ;;  %s422_s10 = sshll.u32 %s215_s9, 4  ;;  %s423_s10 = int_to_ptr.vmem [resolvable:$true] %s422_s10 }
  0x17   : > { %520 = vmatpush3.msra.mxu0 %v223_v2  ;;  %v220_v5 = vld [vmem:[%s219_s17] sm:$0xff]  ;;  %529 = vmatpush3.msra.mxu1 %v241_v6  ;;  %v233_v14 = vld [vmem:[%s883_s3 + $0x38] sm:$0xff]  ;;  %v232_v15 = vld [vmem:[%s883_s3 + $0x30] sm:$0xff]  ;;  %s608_s15 = scalar_lea.vmem %s423_s10, 128  ;;  %s614_s17 = scalar_lea.vmem %s613_s22, 256 }
  0x18   : > { %521 = vmatprep.subr.mxu0 %v670_v1  ;;  %530 = vmatprep.subr.mxu1 %v670_v1  ;;  %v231_v16 = vld [vmem:[%s883_s3 + $0x28] sm:$0xff]  ;;  %v230_v17 = vld [vmem:[%s883_s3 + $0x20] sm:$0xff]  ;;  %v229_v18 = vld [vmem:[%s883_s3 + $0x18] sm:$0xff]  ;;  %p609_p11 = scmp.ne.s32.totalorder %s423_s10, %s608_s15  ;;  %p615_p0 = scmp.lt.s32.totalorder %s423_s10, %s613_s22 }
  0x19   : > { %522 = vmatpush3.msra.mxu0 %v222_v3  ;;  %531 = vmatpush3.msra.mxu1 %v240_v7  ;;  %v228_v19 = vld [vmem:[%s883_s3 + $0x10] sm:$0xff]  ;;  %v227_v20 = vld [vmem:[%s883_s3 + $0x8] sm:$0xff]  ;;  %v226_v21 = vld [vmem:[%s883_s3] sm:$0xff]  ;;  %p616_p1 = scmp.lt.s32.totalorder %s614_s17, %s608_s15 }
  0x1a   : > { %523 = vmatprep.subr.mxu0 %v670_v1  ;;  %532 = vmatprep.subr.mxu1 %v670_v1  ;;  %v487_v22 = vld [vmem:[%s882_s2] ss:$0 sm:$0xff]  ;;  %p610_p12 = pnand %p609_p11, %p741_p5 }
  0x1b   : > { %524 = vmatpush3.msra.mxu0 %v221_v4  ;;  %533 = vmatpush3.msra.mxu1 %v239_v8  ;;  %v490_v31 = vld [vmem:[%s884_s4] ss:$0 sm:$0xff]  ;;  %p617_p2 = por %p616_p1, %p615_p0 }
  0x1c   : > { %526 = vmatmul.mubr.msk.f32.vlgmr.msra.gmra.mxu0 %vm248_vm1, %v220_v5  ;;  %534 = vmatprep.subr.mxu1 %v670_v1  ;;  %p611_p13 = pneg %p610_p12 }
  0x1d   : > { %535 = vmatpush3.msra.mxu1 %v238_v9 }
  0x1e   : > { %536 = vmatprep.subr.mxu1 %v670_v1  ;;  %p618_p3 = pnand %p617_p2, %p611_p13 }
  0x1f   : > { %537 = vmatpush3.msra.mxu1 %v237_v10 }
  0x20   : > { %538 = vmatprep.subr.mxu1 %v670_v1 }
  0x21   : > { %539 = vmatpush3.msra.mxu1 %v236_v11 }
  0x22   : > { %540 = vmatprep.subr.mxu1 %v670_v1 }
  0x23   : > { %541 = vmatpush3.msra.mxu1 %v235_v12 }
  0x24   : > { %542 = vmatprep.subr.mxu1 %v670_v1 }
  0x25   : > { %543 = vmatpush3.msra.mxu1 %v234_v13 }
  0x26   : > { %544 = vmatprep.subr.mxu1 %v670_v1 }
  0x27   : > { %545 = vmatpush3.msra.mxu1 %v233_v14 }
  0x28   : > { %546 = vmatprep.subr.mxu1 %v670_v1 }
  0x29   : > { %547 = vmatpush3.msra.mxu1 %v232_v15 }
  0x2a   : > { %548 = vmatprep.subr.mxu1 %v670_v1 }
  0x2b   : > { %549 = vmatpush3.msra.mxu1 %v231_v16 }
  0x2c   : > { %550 = vmatprep.subr.mxu1 %v670_v1 }
  0x2d   : > { %551 = vmatpush3.msra.mxu1 %v230_v17 }
  0x2e   : > { %552 = vmatprep.subr.mxu1 %v670_v1 }
  0x2f   : > { %553 = vmatpush3.msra.mxu1 %v229_v18 }
  0x30   : > { %554 = vmatprep.subr.mxu1 %v670_v1 }
  0x31   : > { %555 = vmatpush3.msra.mxu1 %v228_v19 }
  0x32   : > { %556 = vmatprep.subr.mxu1 %v670_v1 }
  0x33   : > { %557 = vmatpush3.msra.mxu1 %v227_v20 }
  0x34   : > { %558 = vmatprep.subr.mxu1 %v670_v1 }
  0x35   : > { %559 = vmatpush3.msra.mxu1 %v226_v21 }
  0xdc   : > { %v318_v23 = vpop.f32.mrf.mxu0 }
  0xdd   : > { %v319_v24 = vadd.f32 %v487_v22, %v318_v23 }
  0xde   : > { %v527_v25 = vpop.f32.mrf.mxu0 }
  0xdf   : > { %v489_v26 = vmul.f32 -1.442695, %v319_v24 }
  0xe1   : > { %604 = vpow2.f32 %v489_v26 }
  0xee   : > { %v605_v27 = vpop.eup %604 }
  0xef   : > { %v325_v28 = vadd.f32 1.0, %v605_v27 }
  0xf1   : > { %606 = vrcp.f32 %v325_v28 }
  0xfe   : > { %v607_v29 = vpop.eup %606 }
  0xff   : > { %v328_v30 = vmul.f32 %v607_v29, %v319_v24 }
 0x101   : > { %561 = vmatmul.mubr.f32.vlgmr.msra.gmra.mxu1 %v328_v30 }
 0x1c1   : > { %v402_v32 = vpop.f32.mrf.mxu1 }
 0x1c2   : > { %v403_v33 = vadd.f32 %v490_v31, %v402_v32 }
 0x1c3   : > { %v562_v34 = vpop.f32.mrf.mxu1 }
 0x1c4   : > { %v406_v35 = vmul.f32 0.5, %v403_v33 }
 0x1c6   : > { %407 = vst.msk [vmem:[%s215_s9] sm:$0xff] %vm248_vm1, %v406_v35 }
 0x1c7   : > { %621 = shalt.err (!%p618_p3)
}
 0x1c8   : > { %s622_s23 = scalar_lea.hbm %s420_s13, 128  ;;  %s626_s30 = scalar_lea.hbm %s885_s5, 256 }
 0x1c9   : > { %p623_p4 = scmp.ne.s32.totalorder %s420_s13, %s622_s23  ;;  %p627_p9 = scmp.lt.s32.totalorder %s420_s13, %s885_s5 }
 0x1ca   : > { %p628_p10 = scmp.lt.s32.totalorder %s626_s30, %s622_s23 }
 0x1cb   : > { %p624_p7 = pnand %p623_p4, %p741_p5 }
 0x1cc   : > { %p629_p11 = por %p628_p10, %p627_p9 }
 0x1cd   : > { %p625_p8 = pneg %p624_p7 }
 0x1cf   : > { %p630_p12 = pnand %p629_p11, %p625_p8 }
 0x1d1   : > { %633 = shalt.err (!%p630_p12)
}
 0x1d2   : > { %563 = dma.vmem_to_hbm [thread:$0]  (%p741_p5), %s423_s10, 128, %s420_s13, %s409_s14  }
 0x1d3 PF: > { %p569_p13 = scmp.ge.s32.totalorder %s668_s21, 2  ;;  %s434_s8 = sand.u32 1, %s656_s18  }
 0x1d4   : > { %s435_s9 = scalar_lea.sflag [#allocation3], %s434_s8 }
 0x1d5   : > { %p566_p0 = pnand %p569_p13, %p745_p6 }
 0x1d7   : > { %p567_p1 = pneg %p566_p0 }
 0x1d9   : > { %651 = dma.done.wait (%p567_p1), %s435_s9, 128  }
 0x1da   : > { %653 = vsyncadd (%p567_p1), %s435_s9, 4294967168  ;;  %p15_p2 = scmp.ge.s32.totalorder %s728_s24, 4   ;;  %s888_s18 = smov %s660_s19 }
 0x1db   : > { %s889_s19 = smov %s664_s20  ;;  %s890_s20 = smov %s739_s27 }
 0x1dc   : > { %s891_s21 = smov %s728_s24  ;;  %17 = sbr.rel (!%p15_p2) target bundleno = 3 (0x3), region = 75 }
 0x1e1   :  { %440 = vsyncpa [#allocation3], 1 }
 0x1e2   :  { %442 = vsyncpa [#allocation3 + $0x1], 1 }

</bundles_post_ra>
